<compile_context>
chip_gen: v7x
topology: tpu7x:2x2x1
jax: 0.10.0
libtpu: 0.0.40
codegen_flags: <defaults>
</compile_context>

<pallas_src>
import functools

import jax
import jax.numpy as jnp
from jax import lax
from jax.experimental import pallas as pl
from jax.experimental.pallas import tpu as pltpu

# ---------------- model dims (small, consistent with the module) -------------
AUDIO_DIM = 32   # transformer d_model == audio_dim
TEXT_DIM = 32    # CLIP text embedding dim (linear_proj output)
N_HEADS = 4
FFN_DIM = 64
NEG_INF = -1e9


# ---------------------------------------------------------------------------
# Fused per-example kernel: encoder layer + CLS pick + projection
# ---------------------------------------------------------------------------
def _kw_parallel_kernel(lens_ref,                       # scalar prefetch (SMEM)
                        x_ref, wqkv_ref, wo_ref, w1_ref, w2_ref, pw_ref,
                        vec_ref, out_ref, *, n_heads):
    b = pl.program_id(0)
    x = x_ref[0].astype(jnp.float32)                    # [S, D]
    S, D = x.shape
    hd = D // n_heads
    scale = 1.0 / (hd ** 0.5)

    # ---- unpack the stacked bias / LayerNorm vectors -----------------------
    vec = vec_ref[...]                                  # [9, 3D] f32
    bqkv = vec[0:1, :]                                  # [1, 3D]
    bo   = vec[1:2, :D]
    ln1g = vec[2:3, :D]
    ln1b = vec[3:4, :D]
    ln2g = vec[4:5, :D]
    ln2b = vec[5:6, :D]
    b1   = vec[6:7, :FFN_DIM]
    b2   = vec[7:8, :D]
    pb   = vec[8:9, :TEXT_DIM]

    def mxu(a, w):
        # bf16 operands, f32 accumulation (full MXU rate on v6e/v7x).
        return jnp.dot(a.astype(jnp.bfloat16), w.astype(jnp.bfloat16),
                       preferred_element_type=jnp.float32)

    # ---- fused QKV projection ----------------------------------------------
    qkv = mxu(x, wqkv_ref[...]) + bqkv                  # [S, 3D]
    q = qkv[:, :D] * scale                              # scale folded into q
    k = qkv[:, D:2 * D]
    v = qkv[:, 2 * D:]

    # ---- multi-head attention via per-head lane masks ----------------------
    hrow = lax.broadcasted_iota(jnp.int32, (n_heads, D), 0)
    hcol = lax.broadcasted_iota(jnp.int32, (n_heads, D), 1)
    hmask = ((hcol >= hrow * hd) & (hcol < (hrow + 1) * hd)).astype(jnp.float32)

    # scores: one 2D matmul on flattened, lane-masked q (no k broadcast).
    q_h = q[None, :, :] * hmask[:, None, :]             # [H, S, D]
    q_flat = q_h.reshape(n_heads * S, D).astype(jnp.bfloat16)
    s = jnp.einsum('nd,kd->nk', q_flat, k.astype(jnp.bfloat16),
                   preferred_element_type=jnp.float32)  # [H*S, S]
    s = s.reshape(n_heads, S, S)

    # key-padding mask built in-kernel from the prefetched lengths.
    valid_len = lens_ref[b]                             # audio_len + 1 (CLS)
    col = lax.broadcasted_iota(jnp.int32, (1, S), 1)
    key_bias = jnp.where(col < valid_len, 0.0, NEG_INF).astype(jnp.float32)
    s = s + key_bias[None, :, :]

    s = s - jnp.max(s, axis=-1, keepdims=True)
    p = jnp.exp(s)
    p = p * pl.reciprocal(jnp.sum(p, axis=-1, keepdims=True), approx=True)

    v_h = (v[None, :, :] * hmask[:, None, :]).astype(jnp.bfloat16)   # [H, S, D]
    ctx = jnp.einsum('hqk,hkd->hqd', p.astype(jnp.bfloat16), v_h,
                     preferred_element_type=jnp.float32)             # [H, S, D]
    ctx = jnp.sum(ctx, axis=0)       # heads on disjoint lanes -> sum == concat

    attn = mxu(ctx, wo_ref[...]) + bo

    # ---- post-LN residual blocks -------------------------------------------
    def layernorm(y, g, beta):
        mu = jnp.mean(y, axis=-1, keepdims=True)
        var = jnp.mean((y - mu) ** 2, axis=-1, keepdims=True)
        return (y - mu) * lax.rsqrt(var + 1e-5) * g + beta

    x1 = layernorm(x + attn, ln1g, ln1b)
    ff = jnp.maximum(mxu(x1, w1_ref[...]) + b1, 0.0)
    ff = mxu(ff, w2_ref[...]) + b2
    x2 = layernorm(x1 + ff, ln2g, ln2b)

    # ---- CLS row + linear_proj ----------------------------------------------
    cls_tok = x2[0:1, :]                                # [1, D]
    out = mxu(cls_tok, pw_ref[...]) + pb                # [1, Dt]
    out_ref[...] = out.astype(out_ref.dtype)[None]      # [1, 1, Dt]


# ---------------------------------------------------------------------------
# Forward wrapper (glue: CLS concat, S padding, weight packing)
# ---------------------------------------------------------------------------
@jax.jit
def kw_parallel_branch_forward(audio_feat, audio_feat_len, params):
    B, T, D = audio_feat.shape
    S = T + 1
    S_pad = ((S + 7) // 8) * 8          # sublane-aligned sequence length

    # prepend CLS token, pad sequence (padded rows masked via key padding)
    cls = jnp.broadcast_to(params['cls'], (B, 1, D)).astype(jnp.float32)
    x = jnp.concatenate([cls, audio_feat.astype(jnp.float32)], axis=1)  # [B,S,D]
    if S_pad != S:
        x = jnp.pad(x, ((0, 0), (0, S_pad - S), (0, 0)))

    lens = (audio_feat_len + 1).astype(jnp.int32)       # valid rows incl. CLS

    a = params['attn']
    wqkv = jnp.concatenate([a['wq'], a['wk'], a['wv']], axis=1)         # [D,3D]
    bqkv = jnp.concatenate([a['bq'], a['bk'], a['bv']], axis=1)         # [1,3D]

    W = 3 * D
    def pad_row(r):
        r = r.reshape(1, -1)
        return jnp.pad(r, ((0, 0), (0, W - r.shape[1])))

    vecs = jnp.concatenate([
        pad_row(bqkv), pad_row(a['bo']),
        pad_row(a['ln1_g']), pad_row(a['ln1_b']),
        pad_row(a['ln2_g']), pad_row(a['ln2_b']),
        pad_row(a['b1']), pad_row(a['b2']),
        pad_row(params['proj_b']),
    ], axis=0).astype(jnp.float32)                                      # [9,3D]

    mats = [wqkv, a['wo'], a['w1'], a['w2'], params['proj_w'], vecs]
    mat_specs = [pl.BlockSpec(m.shape, lambda b, lens_ref: (0, 0)) for m in mats]

    kern = functools.partial(_kw_parallel_kernel, n_heads=N_HEADS)
    out = pl.pallas_call(
        kern,
        out_shape=jax.ShapeDtypeStruct((B, 1, TEXT_DIM), jnp.float32),
        grid_spec=pltpu.PrefetchScalarGridSpec(
            num_scalar_prefetch=1,
            grid=(B,),
            in_specs=[pl.BlockSpec((1, S_pad, D), lambda b, lens_ref: (b, 0, 0))]
                     + mat_specs,
            out_specs=pl.BlockSpec((1, 1, TEXT_DIM), lambda b, lens_ref: (b, 0, 0)),
        ),
        compiler_params=pltpu.CompilerParams(
            dimension_semantics=("parallel",)),
    )(lens, x, *mats)

    # TODO(synk): dropout layers are eval-mode identities and are omitted.
    # TODO(synk): the configurable TransformerModels encoder may stack multiple
    # layers; this synthetic config uses a single post-LN encoder layer.
    return {'parallel_audio_feat': out.reshape(B, TEXT_DIM)}


# ---------------------------------------------------------------------------
# Deterministic parameter initialization
# ---------------------------------------------------------------------------
def init_params(key):
    ks = jax.random.split(key, 8)
    D, Dt, F = AUDIO_DIM, TEXT_DIM, FFN_DIM

    def nrm(k, shape, scale=0.02):
        return (jax.random.normal(k, shape) * scale).astype(jnp.float32)

    attn = {
        'wq': nrm(ks[0], (D, D)), 'bq': jnp.zeros((1, D), jnp.float32),
        'wk': nrm(ks[1], (D, D)), 'bk': jnp.zeros((1, D), jnp.float32),
        'wv': nrm(ks[2], (D, D)), 'bv': jnp.zeros((1, D), jnp.float32),
        'wo': nrm(ks[3], (D, D)), 'bo': jnp.zeros((1, D), jnp.float32),
        'ln1_g': jnp.ones((1, D), jnp.float32), 'ln1_b': jnp.zeros((1, D), jnp.float32),
        'ln2_g': jnp.ones((1, D), jnp.float32), 'ln2_b': jnp.zeros((1, D), jnp.float32),
        'w1': nrm(ks[4], (D, F)), 'b1': jnp.zeros((1, F), jnp.float32),
        'w2': nrm(ks[5], (F, D)), 'b2': jnp.zeros((1, D), jnp.float32),
    }
    return {
        'cls': nrm(ks[6], (1, 1, D), scale=1.0),        # torch.randn-style CLS
        'attn': attn,
        'proj_w': nrm(ks[7], (D, Dt)),
        'proj_b': jnp.zeros((1, Dt), jnp.float32),
    }


if __name__ == "__main__":
    key = jax.random.PRNGKey(0)
    pkey, xkey = jax.random.split(key)
    params = init_params(pkey)

    B, T = 2, 15
    audio_feat = jax.random.normal(xkey, (B, T, AUDIO_DIM), dtype=jnp.float32)
    audio_feat_len = jnp.array([15, 11], dtype=jnp.int32)

    out = kw_parallel_branch_forward(audio_feat, audio_feat_len, params)
    jax.block_until_ready(out['parallel_audio_feat'])
    assert out['parallel_audio_feat'].shape == (B, TEXT_DIM)
    print("KERNEL_OK")
</pallas_src>

<mosaic_0001>
module attributes {stable_mosaic.version = 11 : i64} {
  func.func @_kw_parallel_kernel(%arg0: i32, %arg1: memref<2xi32, #tpu.memory_space<smem>>, %arg2: memref<1x16x32xf32, #tpu.memory_space<vmem>>, %arg3: memref<32x96xf32, #tpu.memory_space<vmem>>, %arg4: memref<32x32xf32, #tpu.memory_space<vmem>>, %arg5: memref<32x64xf32, #tpu.memory_space<vmem>>, %arg6: memref<64x32xf32, #tpu.memory_space<vmem>>, %arg7: memref<32x32xf32, #tpu.memory_space<vmem>>, %arg8: memref<9x96xf32, #tpu.memory_space<vmem>>, %arg9: memref<1x1x32xf32, #tpu.memory_space<vmem>>) attributes {dimension_semantics = [#tpu.dimension_semantics<parallel>], iteration_bounds = array<i64: 2>, scalar_prefetch = 1 : i64, scratch_operands = 0 : i64, tpu.core_type = #tpu.core_type<tc>, window_params = [{transform_indices = @transform_0, window_bounds = array<i64: 1, 16, 32>}, {pipeline_mode = #tpu.pipeline_mode<synchronous>, transform_indices = @transform_1, window_bounds = array<i64: 32, 96>}, {pipeline_mode = #tpu.pipeline_mode<synchronous>, transform_indices = @transform_2, window_bounds = array<i64: 32, 32>}, {pipeline_mode = #tpu.pipeline_mode<synchronous>, transform_indices = @transform_3, window_bounds = array<i64: 32, 64>}, {pipeline_mode = #tpu.pipeline_mode<synchronous>, transform_indices = @transform_4, window_bounds = array<i64: 64, 32>}, {pipeline_mode = #tpu.pipeline_mode<synchronous>, transform_indices = @transform_5, window_bounds = array<i64: 32, 32>}, {pipeline_mode = #tpu.pipeline_mode<synchronous>, transform_indices = @transform_6, window_bounds = array<i64: 9, 96>}, {transform_indices = @transform_7, window_bounds = array<i64: 1, 1, 32>}]} {
    %c0 = arith.constant 0 : index
    %c0_0 = arith.constant 0 : index
    %c0_1 = arith.constant 0 : index
    %0 = vector.load %arg2[%c0, %c0_0, %c0_1] : memref<1x16x32xf32, #tpu.memory_space<vmem>>, vector<1x16x32xf32>
    %1 = vector.shape_cast %0 : vector<1x16x32xf32> to vector<16x32xf32>
    %c0_2 = arith.constant 0 : index
    %c0_3 = arith.constant 0 : index
    %2 = vector.load %arg8[%c0_2, %c0_3] : memref<9x96xf32, #tpu.memory_space<vmem>>, vector<9x96xf32>
    %3 = vector.extract_strided_slice %2 {offsets = [0, 0], sizes = [1, 96], strides = [1, 1]} : vector<9x96xf32> to vector<1x96xf32>
    %4 = vector.extract_strided_slice %2 {offsets = [1, 0], sizes = [1, 32], strides = [1, 1]} : vector<9x96xf32> to vector<1x32xf32>
    %5 = vector.extract_strided_slice %2 {offsets = [2, 0], sizes = [1, 32], strides = [1, 1]} : vector<9x96xf32> to vector<1x32xf32>
    %6 = vector.extract_strided_slice %2 {offsets = [3, 0], sizes = [1, 32], strides = [1, 1]} : vector<9x96xf32> to vector<1x32xf32>
    %7 = vector.extract_strided_slice %2 {offsets = [4, 0], sizes = [1, 32], strides = [1, 1]} : vector<9x96xf32> to vector<1x32xf32>
    %8 = vector.extract_strided_slice %2 {offsets = [5, 0], sizes = [1, 32], strides = [1, 1]} : vector<9x96xf32> to vector<1x32xf32>
    %9 = vector.extract_strided_slice %2 {offsets = [6, 0], sizes = [1, 64], strides = [1, 1]} : vector<9x96xf32> to vector<1x64xf32>
    %10 = vector.extract_strided_slice %2 {offsets = [7, 0], sizes = [1, 32], strides = [1, 1]} : vector<9x96xf32> to vector<1x32xf32>
    %11 = vector.extract_strided_slice %2 {offsets = [8, 0], sizes = [1, 32], strides = [1, 1]} : vector<9x96xf32> to vector<1x32xf32>
    %c0_4 = arith.constant 0 : index
    %c0_5 = arith.constant 0 : index
    %12 = vector.load %arg3[%c0_4, %c0_5] : memref<32x96xf32, #tpu.memory_space<vmem>>, vector<32x96xf32>
    %13 = arith.truncf %1 : vector<16x32xf32> to vector<16x32xbf16>
    %14 = arith.truncf %12 : vector<32x96xf32> to vector<32x96xbf16>
    %cst = arith.constant dense<0.000000e+00> : vector<16x96xf32>
    %15 = tpu.matmul %13, %14, %cst {dimension_numbers = #tpu.dot_dimension_numbers<[1], [0], [0], [1], [0, 0, 1, 1], [], []>} : vector<16x32xbf16>, vector<32x96xbf16>, vector<16x96xf32> -> vector<16x96xf32>
    %16 = vector.broadcast %3 : vector<1x96xf32> to vector<16x96xf32>
    %17 = arith.addf %15, %16 : vector<16x96xf32>
    %18 = vector.extract_strided_slice %17 {offsets = [0, 0], sizes = [16, 32], strides = [1, 1]} : vector<16x96xf32> to vector<16x32xf32>
    %cst_6 = arith.constant 0.353553385 : f32
    %19 = vector.broadcast %cst_6 : f32 to vector<16x32xf32>
    %20 = arith.mulf %18, %19 : vector<16x32xf32>
    %21 = vector.extract_strided_slice %17 {offsets = [0, 32], sizes = [16, 32], strides = [1, 1]} : vector<16x96xf32> to vector<16x32xf32>
    %22 = vector.extract_strided_slice %17 {offsets = [0, 64], sizes = [16, 32], strides = [1, 1]} : vector<16x96xf32> to vector<16x32xf32>
    %23 = tpu.iota {dimensions = array<i32: 0>} : vector<4x32xi32>
    %24 = tpu.iota {dimensions = array<i32: 1>} : vector<4x32xi32>
    %c8_i32 = arith.constant 8 : i32
    %25 = vector.broadcast %c8_i32 : i32 to vector<4x32xi32>
    %26 = arith.muli %23, %25 : vector<4x32xi32>
    %27 = arith.cmpi sge, %24, %26 : vector<4x32xi32>
    %c1_i32 = arith.constant 1 : i32
    %28 = vector.broadcast %c1_i32 : i32 to vector<4x32xi32>
    %29 = arith.addi %23, %28 : vector<4x32xi32>
    %c8_i32_7 = arith.constant 8 : i32
    %30 = vector.broadcast %c8_i32_7 : i32 to vector<4x32xi32>
    %31 = arith.muli %29, %30 : vector<4x32xi32>
    %32 = arith.cmpi slt, %24, %31 : vector<4x32xi32>
    %33 = arith.andi %27, %32 : vector<4x32xi1>
    %34 = arith.extui %33 : vector<4x32xi1> to vector<4x32xi32>
    %35 = arith.sitofp %34 : vector<4x32xi32> to vector<4x32xf32>
    %36 = vector.shape_cast %20 : vector<16x32xf32> to vector<1x16x32xf32>
    %37 = vector.shape_cast %35 : vector<4x32xf32> to vector<4x1x32xf32>
    %38 = vector.broadcast %36 : vector<1x16x32xf32> to vector<4x16x32xf32>
    %39 = vector.broadcast %37 : vector<4x1x32xf32> to vector<4x16x32xf32>
    %40 = arith.mulf %38, %39 : vector<4x16x32xf32>
    %41 = vector.shape_cast %40 : vector<4x16x32xf32> to vector<64x32xf32>
    %42 = arith.truncf %41 : vector<64x32xf32> to vector<64x32xbf16>
    %43 = arith.truncf %21 : vector<16x32xf32> to vector<16x32xbf16>
    "tpu.trace_start"() <{level = 10 : i32, message = "nd,kd->nk"}> : () -> ()
    %cst_8 = arith.constant dense<0.000000e+00> : vector<64x16xf32>
    %44 = tpu.matmul %42, %43, %cst_8 {dimension_numbers = #tpu.dot_dimension_numbers<[1], [1], [0], [0], [0, 0, 1, 0], [], []>} : vector<64x32xbf16>, vector<16x32xbf16>, vector<64x16xf32> -> vector<64x16xf32>
    "tpu.trace_stop"() : () -> ()
    %45 = vector.shape_cast %44 : vector<64x16xf32> to vector<4x16x16xf32>
    %46 = arith.index_cast %arg0 : i32 to index
    %47 = memref.load %arg1[%46] : memref<2xi32, #tpu.memory_space<smem>>
    %48 = tpu.iota {dimensions = array<i32: 1>} : vector<1x16xi32>
    %49 = vector.broadcast %47 : i32 to vector<1x16xi32>
    %50 = arith.cmpi slt, %48, %49 : vector<1x16xi32>
    %cst_9 = arith.constant 0.000000e+00 : f32
    %cst_10 = arith.constant -1.000000e+09 : f32
    %51 = vector.broadcast %cst_9 : f32 to vector<1x16xf32>
    %52 = vector.broadcast %cst_10 : f32 to vector<1x16xf32>
    %53 = arith.select %50, %51, %52 : vector<1x16xi1>, vector<1x16xf32>
    %54 = vector.shape_cast %53 : vector<1x16xf32> to vector<1x1x16xf32>
    %55 = vector.broadcast %54 : vector<1x1x16xf32> to vector<4x16x16xf32>
    %56 = arith.addf %45, %55 : vector<4x16x16xf32>
    %cst_11 = arith.constant dense<0xFF800000> : vector<4x16xf32>
    %57 = vector.multi_reduction <maximumf>, %56, %cst_11 [2] : vector<4x16x16xf32> to vector<4x16xf32>
    %58 = vector.shape_cast %57 : vector<4x16xf32> to vector<4x16x1xf32>
    %59 = vector.broadcast %58 : vector<4x16x1xf32> to vector<4x16x16xf32>
    %60 = arith.subf %56, %59 : vector<4x16x16xf32>
    %61 = math.exp %60 : vector<4x16x16xf32>
    %cst_12 = arith.constant dense<0.000000e+00> : vector<4x16xf32>
    %62 = vector.multi_reduction <add>, %61, %cst_12 [2] : vector<4x16x16xf32> to vector<4x16xf32>
    %63 = vector.shape_cast %62 : vector<4x16xf32> to vector<4x16x1xf32>
    %64 = tpu.reciprocal %63 {approx = true} : vector<4x16x1xf32> -> vector<4x16x1xf32>
    %65 = vector.broadcast %64 : vector<4x16x1xf32> to vector<4x16x16xf32>
    %66 = arith.mulf %61, %65 : vector<4x16x16xf32>
    %67 = vector.shape_cast %22 : vector<16x32xf32> to vector<1x16x32xf32>
    %68 = vector.shape_cast %35 : vector<4x32xf32> to vector<4x1x32xf32>
    %69 = vector.broadcast %67 : vector<1x16x32xf32> to vector<4x16x32xf32>
    %70 = vector.broadcast %68 : vector<4x1x32xf32> to vector<4x16x32xf32>
    %71 = arith.mulf %69, %70 : vector<4x16x32xf32>
    %72 = arith.truncf %71 : vector<4x16x32xf32> to vector<4x16x32xbf16>
    %73 = arith.truncf %66 : vector<4x16x16xf32> to vector<4x16x16xbf16>
    "tpu.trace_start"() <{level = 10 : i32, message = "hqk,hkd->hqd"}> : () -> ()
    %cst_13 = arith.constant dense<0.000000e+00> : vector<4x16x32xf32>
    %74 = tpu.matmul %73, %72, %cst_13 {dimension_numbers = #tpu.dot_dimension_numbers<[2], [1], [1], [2], [0, 0, 0, 1, 1, 2], [0], [0]>} : vector<4x16x16xbf16>, vector<4x16x32xbf16>, vector<4x16x32xf32> -> vector<4x16x32xf32>
    "tpu.trace_stop"() : () -> ()
    %cst_14 = arith.constant dense<0.000000e+00> : vector<16x32xf32>
    %75 = vector.multi_reduction <add>, %74, %cst_14 [0] : vector<4x16x32xf32> to vector<16x32xf32>
    %c0_15 = arith.constant 0 : index
    %c0_16 = arith.constant 0 : index
    %76 = vector.load %arg4[%c0_15, %c0_16] : memref<32x32xf32, #tpu.memory_space<vmem>>, vector<32x32xf32>
    %77 = arith.truncf %75 : vector<16x32xf32> to vector<16x32xbf16>
    %78 = arith.truncf %76 : vector<32x32xf32> to vector<32x32xbf16>
    %cst_17 = arith.constant dense<0.000000e+00> : vector<16x32xf32>
    %79 = tpu.matmul %77, %78, %cst_17 {dimension_numbers = #tpu.dot_dimension_numbers<[1], [0], [0], [1], [0, 0, 1, 1], [], []>} : vector<16x32xbf16>, vector<32x32xbf16>, vector<16x32xf32> -> vector<16x32xf32>
    %80 = vector.broadcast %4 : vector<1x32xf32> to vector<16x32xf32>
    %81 = arith.addf %79, %80 : vector<16x32xf32>
    %82 = arith.addf %1, %81 : vector<16x32xf32>
    %cst_18 = arith.constant dense<0.000000e+00> : vector<16xf32>
    %83 = vector.multi_reduction <add>, %82, %cst_18 [1] : vector<16x32xf32> to vector<16xf32>
    %84 = vector.shape_cast %83 : vector<16xf32> to vector<16x1xf32>
    %cst_19 = arith.constant 3.200000e+01 : f32
    %85 = vector.broadcast %cst_19 : f32 to vector<16x1xf32>
    %86 = arith.divf %84, %85 : vector<16x1xf32>
    %87 = vector.broadcast %86 : vector<16x1xf32> to vector<16x32xf32>
    %88 = arith.subf %82, %87 : vector<16x32xf32>
    %89 = arith.mulf %88, %88 : vector<16x32xf32>
    %cst_20 = arith.constant dense<0.000000e+00> : vector<16xf32>
    %90 = vector.multi_reduction <add>, %89, %cst_20 [1] : vector<16x32xf32> to vector<16xf32>
    %91 = vector.shape_cast %90 : vector<16xf32> to vector<16x1xf32>
    %cst_21 = arith.constant 3.200000e+01 : f32
    %92 = vector.broadcast %cst_21 : f32 to vector<16x1xf32>
    %93 = arith.divf %91, %92 : vector<16x1xf32>
    %94 = vector.broadcast %86 : vector<16x1xf32> to vector<16x32xf32>
    %95 = arith.subf %82, %94 : vector<16x32xf32>
    %cst_22 = arith.constant 9.99999974E-6 : f32
    %96 = vector.broadcast %cst_22 : f32 to vector<16x1xf32>
    %97 = arith.addf %93, %96 : vector<16x1xf32>
    %98 = math.rsqrt %97 : vector<16x1xf32>
    %99 = vector.broadcast %98 : vector<16x1xf32> to vector<16x32xf32>
    %100 = arith.mulf %95, %99 : vector<16x32xf32>
    %101 = vector.broadcast %5 : vector<1x32xf32> to vector<16x32xf32>
    %102 = arith.mulf %100, %101 : vector<16x32xf32>
    %103 = vector.broadcast %6 : vector<1x32xf32> to vector<16x32xf32>
    %104 = arith.addf %102, %103 : vector<16x32xf32>
    %c0_23 = arith.constant 0 : index
    %c0_24 = arith.constant 0 : index
    %105 = vector.load %arg5[%c0_23, %c0_24] : memref<32x64xf32, #tpu.memory_space<vmem>>, vector<32x64xf32>
    %106 = arith.truncf %104 : vector<16x32xf32> to vector<16x32xbf16>
    %107 = arith.truncf %105 : vector<32x64xf32> to vector<32x64xbf16>
    %cst_25 = arith.constant dense<0.000000e+00> : vector<16x64xf32>
    %108 = tpu.matmul %106, %107, %cst_25 {dimension_numbers = #tpu.dot_dimension_numbers<[1], [0], [0], [1], [0, 0, 1, 1], [], []>} : vector<16x32xbf16>, vector<32x64xbf16>, vector<16x64xf32> -> vector<16x64xf32>
    %109 = vector.broadcast %9 : vector<1x64xf32> to vector<16x64xf32>
    %110 = arith.addf %108, %109 : vector<16x64xf32>
    %cst_26 = arith.constant 0.000000e+00 : f32
    %111 = vector.broadcast %cst_26 : f32 to vector<16x64xf32>
    %112 = arith.maximumf %110, %111 : vector<16x64xf32>
    %c0_27 = arith.constant 0 : index
    %c0_28 = arith.constant 0 : index
    %113 = vector.load %arg6[%c0_27, %c0_28] : memref<64x32xf32, #tpu.memory_space<vmem>>, vector<64x32xf32>
    %114 = arith.truncf %112 : vector<16x64xf32> to vector<16x64xbf16>
    %115 = arith.truncf %113 : vector<64x32xf32> to vector<64x32xbf16>
    %cst_29 = arith.constant dense<0.000000e+00> : vector<16x32xf32>
    %116 = tpu.matmul %114, %115, %cst_29 {dimension_numbers = #tpu.dot_dimension_numbers<[1], [0], [0], [1], [0, 0, 1, 1], [], []>} : vector<16x64xbf16>, vector<64x32xbf16>, vector<16x32xf32> -> vector<16x32xf32>
    %117 = vector.broadcast %10 : vector<1x32xf32> to vector<16x32xf32>
    %118 = arith.addf %116, %117 : vector<16x32xf32>
    %119 = arith.addf %104, %118 : vector<16x32xf32>
    %cst_30 = arith.constant dense<0.000000e+00> : vector<16xf32>
    %120 = vector.multi_reduction <add>, %119, %cst_30 [1] : vector<16x32xf32> to vector<16xf32>
    %121 = vector.shape_cast %120 : vector<16xf32> to vector<16x1xf32>
    %cst_31 = arith.constant 3.200000e+01 : f32
    %122 = vector.broadcast %cst_31 : f32 to vector<16x1xf32>
    %123 = arith.divf %121, %122 : vector<16x1xf32>
    %124 = vector.broadcast %123 : vector<16x1xf32> to vector<16x32xf32>
    %125 = arith.subf %119, %124 : vector<16x32xf32>
    %126 = arith.mulf %125, %125 : vector<16x32xf32>
    %cst_32 = arith.constant dense<0.000000e+00> : vector<16xf32>
    %127 = vector.multi_reduction <add>, %126, %cst_32 [1] : vector<16x32xf32> to vector<16xf32>
    %128 = vector.shape_cast %127 : vector<16xf32> to vector<16x1xf32>
    %cst_33 = arith.constant 3.200000e+01 : f32
    %129 = vector.broadcast %cst_33 : f32 to vector<16x1xf32>
    %130 = arith.divf %128, %129 : vector<16x1xf32>
    %131 = vector.broadcast %123 : vector<16x1xf32> to vector<16x32xf32>
    %132 = arith.subf %119, %131 : vector<16x32xf32>
    %cst_34 = arith.constant 9.99999974E-6 : f32
    %133 = vector.broadcast %cst_34 : f32 to vector<16x1xf32>
    %134 = arith.addf %130, %133 : vector<16x1xf32>
    %135 = math.rsqrt %134 : vector<16x1xf32>
    %136 = vector.broadcast %135 : vector<16x1xf32> to vector<16x32xf32>
    %137 = arith.mulf %132, %136 : vector<16x32xf32>
    %138 = vector.broadcast %7 : vector<1x32xf32> to vector<16x32xf32>
    %139 = arith.mulf %137, %138 : vector<16x32xf32>
    %140 = vector.broadcast %8 : vector<1x32xf32> to vector<16x32xf32>
    %141 = arith.addf %139, %140 : vector<16x32xf32>
    %142 = vector.extract_strided_slice %141 {offsets = [0, 0], sizes = [1, 32], strides = [1, 1]} : vector<16x32xf32> to vector<1x32xf32>
    %c0_35 = arith.constant 0 : index
    %c0_36 = arith.constant 0 : index
    %143 = vector.load %arg7[%c0_35, %c0_36] : memref<32x32xf32, #tpu.memory_space<vmem>>, vector<32x32xf32>
    %144 = arith.truncf %142 : vector<1x32xf32> to vector<1x32xbf16>
    %145 = arith.truncf %143 : vector<32x32xf32> to vector<32x32xbf16>
    %cst_37 = arith.constant dense<0.000000e+00> : vector<1x32xf32>
    %146 = tpu.matmul %144, %145, %cst_37 {dimension_numbers = #tpu.dot_dimension_numbers<[1], [0], [0], [1], [0, 0, 1, 1], [], []>} : vector<1x32xbf16>, vector<32x32xbf16>, vector<1x32xf32> -> vector<1x32xf32>
    %147 = arith.addf %146, %11 : vector<1x32xf32>
    %148 = vector.shape_cast %147 : vector<1x32xf32> to vector<1x1x32xf32>
    %c0_38 = arith.constant 0 : index
    %c0_39 = arith.constant 0 : index
    %c0_40 = arith.constant 0 : index
    %149 = vector.load %arg9[%c0_38, %c0_39, %c0_40] : memref<1x1x32xf32, #tpu.memory_space<vmem>>, vector<1x1x32xf32>
    tpu.vector_store %arg9[%c0_38, %c0_39, %c0_40], %148 {strides = array<i32>} : memref<1x1x32xf32, #tpu.memory_space<vmem>>, vector<1x1x32xf32>,
    return
  }
  func.func @transform_0(%arg0: i32, %arg1: memref<2xi32, #tpu.memory_space<smem>>) -> (i32, i32, i32) {
    %c0_i32 = arith.constant 0 : i32
    %c0_i32_0 = arith.constant 0 : i32
    %c0_i32_1 = arith.constant 0 : i32
    return %arg0, %c0_i32, %c0_i32_0 : i32, i32, i32
  }
  func.func @transform_1(%arg0: i32, %arg1: memref<2xi32, #tpu.memory_space<smem>>) -> (i32, i32) {
    %c0_i32 = arith.constant 0 : i32
    %c0_i32_0 = arith.constant 0 : i32
    %c0_i32_1 = arith.constant 0 : i32
    return %c0_i32, %c0_i32_0 : i32, i32
  }
  func.func @transform_2(%arg0: i32, %arg1: memref<2xi32, #tpu.memory_space<smem>>) -> (i32, i32) {
    %c0_i32 = arith.constant 0 : i32
    %c0_i32_0 = arith.constant 0 : i32
    %c0_i32_1 = arith.constant 0 : i32
    return %c0_i32, %c0_i32_0 : i32, i32
  }
  func.func @transform_3(%arg0: i32, %arg1: memref<2xi32, #tpu.memory_space<smem>>) -> (i32, i32) {
    %c0_i32 = arith.constant 0 : i32
    %c0_i32_0 = arith.constant 0 : i32
    %c0_i32_1 = arith.constant 0 : i32
    return %c0_i32, %c0_i32_0 : i32, i32
  }
  func.func @transform_4(%arg0: i32, %arg1: memref<2xi32, #tpu.memory_space<smem>>) -> (i32, i32) {
    %c0_i32 = arith.constant 0 : i32
    %c0_i32_0 = arith.constant 0 : i32
    %c0_i32_1 = arith.constant 0 : i32
    return %c0_i32, %c0_i32_0 : i32, i32
  }
  func.func @transform_5(%arg0: i32, %arg1: memref<2xi32, #tpu.memory_space<smem>>) -> (i32, i32) {
    %c0_i32 = arith.constant 0 : i32
    %c0_i32_0 = arith.constant 0 : i32
    %c0_i32_1 = arith.constant 0 : i32
    return %c0_i32, %c0_i32_0 : i32, i32
  }
  func.func @transform_6(%arg0: i32, %arg1: memref<2xi32, #tpu.memory_space<smem>>) -> (i32, i32) {
    %c0_i32 = arith.constant 0 : i32
    %c0_i32_0 = arith.constant 0 : i32
    %c0_i32_1 = arith.constant 0 : i32
    return %c0_i32, %c0_i32_0 : i32, i32
  }
  func.func @transform_7(%arg0: i32, %arg1: memref<2xi32, #tpu.memory_space<smem>>) -> (i32, i32, i32) {
    %c0_i32 = arith.constant 0 : i32
    %c0_i32_0 = arith.constant 0 : i32
    %c0_i32_1 = arith.constant 0 : i32
    return %arg0, %c0_i32, %c0_i32_0 : i32, i32, i32
  }
}

</mosaic_0001>

<bundles_post_ra>
// kernel: kw_parallel_branch_forward.1
= control target key start
LH: loop header
LB: loop body
LE: loop exit
PB: predicated region body
PF: predicated region fallthrough
CT: control target
= control target key end

     0   :  { %s1910_s0 = inlined_call_operand.vmem [shape: s32[2], index: 0, kind: input, shape index: {}]   ;;  %s1911_s1 = inlined_call_operand.vmem [shape: f32[2,16,32], index: 1, kind: input, shape index: {}]   ;;  %s1912_s2 = inlined_call_operand.vmem [shape: f32[32,96], index: 2, kind: input, shape index: {}]   ;;  %s1913_s3 = inlined_call_operand.vmem [shape: f32[32,32], index: 3, kind: input, shape index: {}]   ;;  %s1914_s4 = inlined_call_operand.vmem [shape: f32[32,64], index: 4, kind: input, shape index: {}]   ;;  %s1915_s5 = inlined_call_operand.vmem [shape: f32[64,32], index: 5, kind: input, shape index: {}]   ;;  %s1916_s6 = inlined_call_operand.vmem [shape: f32[32,32], index: 6, kind: input, shape index: {}]   ;;  %s1917_s7 = inlined_call_operand.vmem [shape: f32[9,96], index: 7, kind: input, shape index: {}]   ;;  %s1918_s8 = inlined_call_operand.hbm [shape: f32[2,1,32], index: 8, kind: output, shape index: {}]  }
   0x1   :  { %s13_s29 = sshll.u32 %s1910_s0, 4  ;;  %s14_s29 = int_to_ptr.vmem [resolvable:$true] %s13_s29 }
   0x2   :  { %s1409_s30 = scalar_lea.vmem %s14_s29, 16  ;;  %p1414_p1 = scmp.lt.s32.totalorder %s14_s29, %s14_s29 }
   0x3   :  { %p1410_p0 = scmp.ne.s32.totalorder %s14_s29, %s1409_s30  ;;  %p1415_p2 = scmp.lt.s32.totalorder %s1409_s30, %s1409_s30 }
   0x5   :  { %p1416_p3 = por %p1415_p2, %p1414_p1 }
   0x7   :  { %p1417_p4 = pnand %p1416_p3, %p1410_p0 }
   0x9   :  { %1420 = shalt.err (!%p1417_p4)  }
   0xa   :  { %s1487_s9 = smov [#allocation3]  }
   0xb   :  { %16 = dma.vmem_to_smem %s14_s29, 16, %s1487_s9, [#allocation2] }
   0xc   :  { %1465 = dma.done.wait [#allocation2], 16 }
   0xd   :  { %1466 = vsyncadd [#allocation2], 4294967280 }
   0xe   :  { %18 = sfence }
   0xf   :  { %19 = vsyncpa [#allocation5], 0 }
  0x10   :  { %21 = vsyncpa [#allocation5 + $0x1], 0  ;;  %s1543_s10 = smov 0   ;;  %s1545_s11 = smov 0  }
  0x11   :  { %s1547_s0 = smov 0   ;;  %s1549_s12 = smov 0  }
  0x12 LB: > { %s1564_s13 = sadd.s32 4294967295, %s1485_s12   ;;  %s1192_s14 = sadd.s32 4294967294, %s1485_s12   ;;  %s1485_s12 = sphi %s1549_s12, %s1924_s12   ;;  %s1481_s0 = sphi %s1547_s0, %s1923_s0   ;;  %s1477_s11 = sphi %s1545_s11, %s1922_s11   ;;  %s1473_s10 = sphi %s1543_s10, %s1921_s10  }
  0x13   : > { %s1568_s15 = sadd.s32 1, %s1485_s12   ;;  %s186_s16 = sadd.s32 1, %s1481_s0 }
  0x14   : > { %s183_s17 = ssub.s32 %s1485_s12, %s1568_s15  ;;  %p196_p5 = scmp.ne.s32.totalorder %s1481_s0, %s1477_s11 }
  0x15   : > { %p184_p6 = scmp.eq.s32.totalorder %s183_s17, 0  ;;  %p197_p7 = scmp.eq.s32.totalorder %s1564_s13, 1 }
  0x16   : > { %p202_p8 = scmp.ne.s32.totalorder %s1477_s11, %s1473_s10  ;;  %p203_p9 = scmp.eq.s32.totalorder %s1192_s14, 1 }
  0x17   : > { %s1579_s18 = scalar_select %p184_p6, %s1481_s0, %s186_s16  }
  0x18   : > { %p1581_p10 = por %p197_p7, %p196_p5  ;;  %p1585_p11 = por %p203_p9, %p202_p8 }
  0x19   : > { %p1195_p12 = scmp.ge.s32.totalorder %s1485_s12, 1  ;;  %p247_p13 = scmp.lt.s32.totalorder %s1485_s12, 3 }
  0x1b   : > { %p248_p0 = pnand %p1195_p12, %p247_p13 }
  0x1c   : > { %v288_v0 = vld [vmem:[%s1912_s2] sm:$0xff] (!%p248_p0)  ;;  %v289_v1 = vld [vmem:[%s1912_s2 + $0x8] sm:$0xff] (!%p248_p0)  ;;  %v290_v2 = vld [vmem:[%s1912_s2 + $0x10] sm:$0xff] (!%p248_p0)  ;;  %p278_p1 = scmp.lt.s32.totalorder (!%p248_p0), %s1564_s13, 1  ;;  %v295_v3 = vlaneseq (!%p248_p0)  ;;  %v1488_v4 = vmov (!%p248_p0), 0.0   ;;  %vm1489_vm0 = vmmov (!%p248_p0), 0  }
  0x1d   : > { %251 = sbr.rel (%p248_p0) target bundleno = 2761 (0xac9), region = 48  ;;  %1246 = vmatprep.subr.bf16.mxu0 (!%p248_p0), %v1488_v4  ;;  %v293_v5 = vpack.c.bf16 (!%p248_p0), %v289_v1, %v288_v0  ;;  %v291_v6 = vld [vmem:[%s1912_s2 + $0x18] sm:$0xff] (!%p248_p0)  ;;  %1250 = vmatprep.mubr.msk.bf16.mxu0 (!%p248_p0), %vm1489_vm0, %v1488_v4  ;;  %v1490_v9 = vmov (!%p248_p0), 1966171168   ;;  %vm299_vm2 = vcmask (!%p248_p0), 261120   ;;  %s1491_s17 = smov (!%p248_p0), 64  }
  0x1e   : > { %v1608_v7 = vshrl.u32 (!%p248_p0), %v295_v3, 7  ;;  %v1610_v8 = vand.u32 (!%p248_p0), 127, %v295_v3  ;;  %v360_v10 = vunpack.c.l.s4 (!%p248_p0), %v1490_v9  ;;  %v294_v11 = vpack.c.bf16 (!%p248_p0), %v291_v6, %v290_v2  ;;  %v1637_v27 = vld [vmem:[%s1917_s7] sm:$0xff] (!%p248_p0)  ;;  %s1492_s23 = smov (!%p248_p0), 96   ;;  %s499_s24 = sld [smem:[#allocation3 + %s1564_s13]] (!%p248_p0) }
  0x1f   : > { %1247 = vmatpush3.bf16.msra.mxu0 (!%p248_p0), %v293_v5  ;;  %v1493_v58 = vmov (!%p248_p0), -1e+09   ;;  %vm511_vm6 = vcmask (!%p248_p0), 130048   ;;  %vm1004_vm7 = vcmask (!%p248_p0), 523264   ;;  %s1212_s26 = sshll.u32 (!%p248_p0), %s1564_s13, 4  ;;  %vm1122_vm8 = vcmask (!%p248_p0), 253952  }
  0x20   : > { %1248 = vmatprep.subr.bf16.mxu0 (!%p248_p0), %v1488_v4  ;;  %v350_v12 = vmul.u32 (!%p248_p0), 8, %v1608_v7  ;;  %v352_v13 = vadd.s32 (!%p248_p0), 1, %v1608_v7  ;;  %v361_v14 = vunpack.c.0.s8 (!%p248_p0), %v360_v10  ;;  %v297_v21 = vsub.s32 (!%p248_p0), 0, %v1608_v7  ;;  %s1868_s9 = scalar_lea.hbm (!%p248_p0), %s1918_s8, %s1212_s26 }
  0x22   : > { %vm351_vm1 = vcmp.ge.s32.totalorder (!%p248_p0), %v1610_v8, %v350_v12  ;;  %v353_v17 = vmul.u32 (!%p248_p0), 8, %v352_v13  ;;  %v364_v19 = vsub.s32 (!%p248_p0), %v361_v14, %v1608_v7  ;;  %v298_v28 = vrot.slane (!%p248_p0), %v1637_v27, %v297_v21 }
  0x23   : > { %1249 = vmatpush3.bf16.msra.mxu0 (!%p248_p0), %v294_v11 }
  0x24   : > { %s279_s29 = scalar_select %p278_p1, %s1564_s13, 1  ;;  %vm354_vm3 = vcmp.lt.s32.totalorder %v1610_v8, %v353_v17  ;;  %1264 = vmatprep.subr.bf16.mxu0 %v1488_v4  ;;  %v500_v57 = vstv %s499_s24 }
  0x25   : > { %vm355_vm4 = vmand %vm351_vm1, %vm354_vm3  ;;  %vm501_vm5 = vcmp.lt.s32.totalorder %v1610_v8, %v500_v57 }
  0x26   : > { %s1215_s30 = sshll.u32 %s279_s29, 4  ;;  %v1199_v20 = vsel %vm355_vm4, 1.0, %v1488_v4  ;;  %v502_v59 = vsel %vm501_vm5, 0.0, %v1493_v58 }
  0x27   : > { %s282_s16 = scalar_lea.vmem %s1911_s1, %s1215_s30  ;;  %v365_v22 = vrot.slane %v1199_v20, %v364_v19 }
  0x28   : > { %v1618_v15 = vld [vmem:[%s282_s16] sm:$0xff]  ;;  %v1620_v16 = vld [vmem:[%s282_s16 + $0x8] sm:$0xff]  ;;  %s1494_s16 = smov [#allocation4]  }
  0x29   : > { %v292_v18 = vpack.c.bf16 %v1620_v16, %v1618_v15  ;;  %v366_v23 = vcombine.high %v365_v22, %v365_v22  ;;  %v373_v24 = vrot.slane %v365_v22, %v364_v19 }
  0x2b   : > { %1251 = vmatmul.mubr.msk.bf16.vlgmr.msra.gmra.mrb[0].mxu0 %vm299_vm2, %v292_v18  ;;  %v380_v25 = vrot.slane %v366_v23, %v364_v19  ;;  %v386_v26 = vrot.slane %v373_v24, %v297_v21  ;;  %v381_v29 = vcombine.high %v373_v24, %v373_v24 }
  0x2c   : > { %1266 = vmatprep.mubr.msk.bf16.mxu0 %vm1489_vm0, %v1488_v4 }
  0x2d   : > { %600 = vrot.lane.b32.xlu1 %v386_v26, %s1491_s17  ;;  %v382_v30 = vcombine.high %v380_v25, %v380_v25  ;;  %v394_v34 = vrot.slane %v381_v29, %v297_v21  ;;  %v390_v36 = vrot.slane %v380_v25, %v297_v21 }
  0x2f   : > { %v1642_v37 = vrot.slane %v382_v30, %v297_v21 }
  0x9f   : > { %v601_v24 = vpop.permute.xlu1 %600 }
  0xfe   : > { %v337_v31 = vpop.f32.mrb[0].mxu0 }
  0xff   : > { %v1640_v32 = vadd.f32 %v337_v31, %v298_v28  ;;  %v1252_v33 = vpop.f32.mrb[1].mxu0 }
 0x100   : > { %v340_v35 = vpop.f32.mrb[2].mxu0 }
 0x101   : > { %v1644_v38 = vadd.f32 %v340_v35, %v298_v28  ;;  %v1253_v39 = vpop.f32.mrb[3].mxu0  ;;  %v344_v40 = vmul.f32 0.35355338, %v1640_v32 }
 0x103   : > { %v415_v41 = vpack.c.bf16 %v1644_v38, %v1640_v32  ;;  %v345_v42 = vmul.f32 0.35355338, %v1644_v38  ;;  %v403_v43 = vmul.f32 %v386_v26, %v344_v40  ;;  %v405_v44 = vmul.f32 %v390_v36, %v344_v40 }
 0x104   : > { %v407_v45 = vmul.f32 %v394_v34, %v344_v40  ;;  %v409_v46 = vmul.f32 %v1642_v37, %v344_v40 }
 0x105   : > { %417 = vrot.lane.b32.xlu0 %v415_v41, %s1492_s23  ;;  %v404_v47 = vmul.f32 %v386_v26, %v345_v42  ;;  %v406_v48 = vmul.f32 %v390_v36, %v345_v42  ;;  %v408_v49 = vmul.f32 %v394_v34, %v345_v42  ;;  %v410_v50 = vmul.f32 %v1642_v37, %v345_v42  ;;  %s276_s23 = sand.u32 1, %s1477_s11  }
 0x106   : > { %s277_s27 = scalar_lea.vmem [#allocation4], %s276_s23  ;;  %s1125_s13 = scalar_lea.sflag [#allocation5], %s276_s23 }
 0x107   : > { %v411_v51 = vpack.c.bf16 %v404_v47, %v403_v43  ;;  %v412_v52 = vpack.c.bf16 %v406_v48, %v405_v44  ;;  %v413_v53 = vpack.c.bf16 %v408_v49, %v407_v45  ;;  %v414_v54 = vpack.c.bf16 %v410_v50, %v409_v46  ;;  %s1137_s28 = sshll.u32 %s277_s27, 4  ;;  %s1870_s28 = int_to_ptr.vmem [resolvable:$true] %s1137_s28 }
 0x108   : > { %s1421_s14 = scalar_lea.vmem %s1870_s28, 16 }
 0x109   : > { %1256 = vmatprep.mubr.msk.bf16.mxu1 %vm299_vm2, %v411_v51  ;;  %p1422_p2 = scmp.ne.s32.totalorder %s1870_s28, %s1421_s14 }
 0x10b   : > { %p1423_p3 = pnand %p1422_p2, %p1581_p10 }
 0x10d   : > { %p1424_p4 = pneg %p1423_p3 }
 0x177   : > { %v418_v55 = vpop.permute.xlu0 %417 }
 0x178   : > { %1324 = vmatprep.subr.msk.bf16.mxu1 %vm299_vm2, %v418_v55  ;;  %v432_v56 = vsel %vm299_vm2, %v418_v55, 0  ;;  %v613_v55 = vmul.f32 %v601_v24, %v1644_v38 }
 0x179   : > { %1255 = vmatpush3.bf16.xpose.msra.mxu1 %v432_v56  ;;  %v612_v56 = vmul.f32 %v601_v24, %v1640_v32 }
 0x17a   : > { %1276 = vmatprep.subr.bf16.mxu1 %v1488_v4 }
 0x17b   : > { %v620_v57 = vpack.c.bf16 %v613_v55, %v612_v56  ;;  %v834_v56 = vld [vmem:[%s1913_s3] sm:$0xff] }
 0x180   : > { %1257 = vmatmul.mubr.msk.bf16.vlgmr.msra.gmra.mrb[0].mxu1 %vm299_vm2, %v412_v52 }
 0x181   : > { %1260 = vmatprep.mubr.msk.bf16.mxu1 %vm299_vm2, %v413_v53 }
 0x188   : > { %1261 = vmatmul.mubr.msk.bf16.gmra.mrb[4].mxu1 %vm299_vm2, %v414_v54 }
 0x189   : > { %1278 = vmatprep.mubr.msk.bf16.mxu1 %vm1489_vm0, %v1488_v4 }
 0x253   : > { %v1258_v60 = vpop.f32.mrb[0].mxu1 }
 0x254   : > { %v505_v61 = vadd.f32 %v1258_v60, %v502_v59  ;;  %v468_v62 = vpop.f32.mrb[1].mxu1 }
 0x255   : > { %v503_v63 = vadd.f32 %v502_v59, %v468_v62  ;;  %v1259_v0 = vpop.f32.mrb[2].mxu1 }
 0x256   : > { %v471_v1 = vpop.f32.mrb[3].mxu1  ;;  %v518_v2 = vsel %vm511_vm6, %v505_v61, -inf  ;;  %v506_v13 = vadd.f32 %v1259_v0, %v502_v59 }
 0x257   : > { %519 = vmax.xlane.f32.xlu1 %v518_v2  ;;  %v512_v3 = vsel %vm511_vm6, %v503_v63, -inf  ;;  %v504_v14 = vadd.f32 %v502_v59, %v471_v1 }
 0x258   : > { %513 = vmax.xlane.f32.xlu0 %v512_v3  ;;  %v521_v17 = vsel %vm511_vm6, %v506_v13, -inf }
 0x259   : > { %v515_v19 = vsel %vm511_vm6, %v504_v14, -inf }
 0x25b   : > { %v1262_v5 = vpop.f32.mrb[4].mxu1 }
 0x25c   : > { %v484_v6 = vpop.f32.mrb[5].mxu1  ;;  %v509_v18 = vadd.f32 %v1262_v5, %v502_v59 }
 0x25d   : > { %v1665_v9 = vadd.f32 %v502_v59, %v484_v6  ;;  %v1263_v8 = vpop.f32.mrb[6].mxu1 }
 0x25e   : > { %v1667_v10 = vadd.f32 %v1263_v8, %v502_v59  ;;  %v487_v11 = vpop.f32.mrb[7].mxu1  ;;  %v530_v20 = vsel %vm511_vm6, %v509_v18, -inf }
 0x25f   : > { %v1669_v12 = vadd.f32 %v502_v59, %v487_v11  ;;  %v524_v21 = vsel %vm511_vm6, %v1665_v9, -inf }
 0x260   : > { %v533_v22 = vsel %vm511_vm6, %v1667_v10, -inf }
 0x261   : > { %v527_v23 = vsel %vm511_vm6, %v1669_v12, -inf }
 0x268   : > { %604 = vrot.lane.b32.xlu1 %v394_v34, %s1491_s17 }
 0x26e   : > { %602 = vrot.lane.b32.xlu0 %v390_v36, %s1491_s17 }
 0x28c   : > { %522 = vmax.xlane.f32.xlu1 %v521_v17 }
 0x290   : > { %516 = vmax.xlane.f32.xlu1 %v515_v19 }
 0x294   : > { %531 = vmax.xlane.f32.xlu1 %v530_v20 }
 0x298   : > { %525 = vmax.xlane.f32.xlu1 %v524_v21 }
 0x29c   : > { %534 = vmax.xlane.f32.xlu1 %v533_v22 }
 0x2a0   : > { %528 = vmax.xlane.f32.xlu1 %v527_v23 }
 0x2b1   : > { %606 = vrot.lane.b32.xlu1 %v1642_v37, %s1491_s17 }
 0x2e4   : > { %v520_v25 = vpop.xlane.xlu1 %519 }
 0x2e5   : > { %v538_v26 = vsub.f32 %v505_v61, %v520_v25  ;;  %v514_v28 = vpop.xlane.xlu0 %513 }
 0x2e6   : > { %v536_v29 = vsub.f32 %v503_v63, %v514_v28 }
 0x2e7   : > { %v548_v30 = vmul.f32 1.442695, %v538_v26 }
 0x2e8   : > { %v544_v31 = vmul.f32 1.442695, %v536_v29  ;;  %v605_v37 = vpop.permute.xlu1 %604 }
 0x2e9   : > { %1371 = vpow2.f32 %v548_v30  ;;  %v603_v49 = vpop.permute.xlu0 %602  ;;  %v617_v17 = vmul.f32 %v605_v37, %v1644_v38 }
 0x2ea   : > { %1373 = vpow2.f32 %v544_v31  ;;  %v614_v50 = vmul.f32 %v603_v49, %v1640_v32  ;;  %v615_v51 = vmul.f32 %v603_v49, %v1644_v38 }
 0x2ec   : > { %v621_v53 = vpack.c.bf16 %v615_v51, %v614_v50 }
 0x2f3   : > { %v1684_v33 = vpop.eup %1371 }
 0x2f4   : > { %v1686_v34 = vpop.eup %1373  ;;  %v566_v35 = vsel %vm511_vm6, %v1684_v33, 0.0 }
 0x2f5   : > { %567 = vadd.xlane.f32.xlu0 %v566_v35  ;;  %v560_v36 = vsel %vm511_vm6, %v1686_v34, 0.0 }
 0x2f6   : > { %561 = vadd.xlane.f32.xlu1 %v560_v36 }
 0x319   : > { %v523_v39 = vpop.xlane.xlu1 %522 }
 0x31a   : > { %v539_v40 = vsub.f32 %v506_v13, %v523_v39 }
 0x31c   : > { %v550_v41 = vmul.f32 1.442695, %v539_v40 }
 0x31d   : > { %v517_v42 = vpop.xlane.xlu1 %516 }
 0x31e   : > { %1375 = vpow2.f32 %v550_v41  ;;  %v537_v43 = vsub.f32 %v504_v14, %v517_v42  ;;  %v616_v14 = vmul.f32 %v605_v37, %v1640_v32 }
 0x320   : > { %v546_v44 = vmul.f32 1.442695, %v537_v43 }
 0x321   : > { %v532_v52 = vpop.xlane.xlu1 %531 }
 0x322   : > { %1377 = vpow2.f32 %v546_v44  ;;  %v542_v61 = vsub.f32 %v509_v18, %v532_v52  ;;  %v622_v18 = vpack.c.bf16 %v617_v17, %v616_v14 }
 0x324   : > { %v556_v0 = vmul.f32 1.442695, %v542_v61 }
 0x325   : > { %v526_v54 = vpop.xlane.xlu1 %525 }
 0x326   : > { %v540_v1 = vsub.f32 %v1665_v9, %v526_v54 }
 0x328   : > { %v1692_v45 = vpop.eup %1375  ;;  %v552_v3 = vmul.f32 1.442695, %v540_v1 }
 0x329   : > { %v569_v46 = vsel %vm511_vm6, %v1692_v45, 0.0  ;;  %v535_v58 = vpop.xlane.xlu1 %534 }
 0x32a   : > { %570 = vadd.xlane.f32.xlu1 %v569_v46  ;;  %v543_v59 = vsub.f32 %v1667_v10, %v535_v58 }
 0x32c   : > { %v1696_v47 = vpop.eup %1377  ;;  %v558_v62 = vmul.f32 1.442695, %v543_v59  ;;  %v836_v59 = vld [vmem:[%s1913_s3 + $0x10] sm:$0xff] }
 0x32d   : > { %v563_v48 = vsel %vm511_vm6, %v1696_v47, 0.0  ;;  %v529_v60 = vpop.xlane.xlu1 %528 }
 0x32e   : > { %564 = vadd.xlane.f32.xlu0 %v563_v48  ;;  %v541_v63 = vsub.f32 %v1669_v12, %v529_v60  ;;  %1379 = vpow2.f32 %v558_v62  ;;  %v837_v60 = vld [vmem:[%s1913_s3 + $0x18] sm:$0xff] }
 0x32f   : > { %1381 = vpow2.f32 %v556_v0  ;;  %v840_v61 = vpack.c.bf16 %v837_v60, %v836_v59  ;;  %v987_v60 = vld [vmem:[%s1915_s5] sm:$0xff] }
 0x330   : > { %v554_v2 = vmul.f32 1.442695, %v541_v63 }
 0x331   : > { %v607_v19 = vpop.permute.xlu1 %606 }
 0x332   : > { %1383 = vpow2.f32 %v554_v2  ;;  %v618_v20 = vmul.f32 %v607_v19, %v1640_v32  ;;  %v619_v21 = vmul.f32 %v607_v19, %v1644_v38 }
 0x333   : > { %1385 = vpow2.f32 %v552_v3 }
 0x334   : > { %v623_v22 = vpack.c.bf16 %v619_v21, %v618_v20 }
 0x338   : > { %v1709_v5 = vpop.eup %1379 }
 0x339   : > { %v1711_v6 = vpop.eup %1381  ;;  %v581_v8 = vsel %vm511_vm6, %v1709_v5, 0.0 }
 0x33a   : > { %v578_v11 = vsel %vm511_vm6, %v1711_v6, 0.0 }
 0x33b   : > { %677 = vrot.lane.b32.xlu1 %v621_v53, %s1491_s17 }
 0x33c   : > { %v1715_v10 = vpop.eup %1383 }
 0x33d   : > { %v575_v9 = vsel %vm511_vm6, %v1715_v10, 0.0  ;;  %v1721_v12 = vpop.eup %1385 }
 0x33e   : > { %v572_v13 = vsel %vm511_vm6, %v1721_v12, 0.0 }
 0x344   : > { %629 = vrot.lane.b32.xlu0 %v620_v57, %s1491_s17  ;;  %v835_v57 = vld [vmem:[%s1913_s3 + $0x8] sm:$0xff] }
 0x345   : > { %v839_v58 = vpack.c.bf16 %v835_v57, %v834_v56  ;;  %v932_v57 = vld [vmem:[%s1914_s4 + $0x10] sm:$0xff] }
 0x35f   : > { %582 = vadd.xlane.f32.xlu1 %v581_v8 }
 0x363   : > { %579 = vadd.xlane.f32.xlu0 %v578_v11  ;;  %576 = vadd.xlane.f32.xlu1 %v575_v9 }
 0x367   : > { %573 = vadd.xlane.f32.xlu0 %v572_v13 }
 0x374   : > { %725 = vrot.lane.b32.xlu1 %v622_v18, %s1491_s17 }
 0x37d   : > { %773 = vrot.lane.b32.xlu0 %v623_v22, %s1491_s17  ;;  %s1425_s17 = sshll.u32 %s1494_s16, 4  ;;  %s1426_s17 = int_to_ptr.vmem [resolvable:$false] %s1425_s17 }
 0x37e   : > { %s1427_s21 = scalar_lea.vmem %s1426_s17, 32  ;;  %p1428_p5 = scmp.lt.s32.totalorder %s1870_s28, %s1426_s17 }
 0x37f   : > { %p1429_p6 = scmp.lt.s32.totalorder %s1427_s21, %s1421_s14 }
 0x381   : > { %p1430_p7 = por %p1429_p6, %p1428_p5 }
 0x382   : > { %v568_v23 = vpop.xlane.xlu0 %567 }
 0x383   : > { %v562_v24 = vpop.xlane.xlu1 %561  ;;  %p1431_p8 = pnand %p1430_p7, %p1424_p4 }
 0x384   : > { %1387 = vrcp.f32 %v562_v24 }
 0x38e   : > { %v1388_v29 = vpop.eup %1387 }
 0x38f   : > { %v592_v32 = vmul.f32 %v1388_v29, %v1686_v34 }
 0x3b7   : > { %v571_v26 = vpop.xlane.xlu1 %570 }
 0x3bb   : > { %v565_v25 = vpop.xlane.xlu0 %564  ;;  %v678_v36 = vpop.permute.xlu1 %677 }
 0x3bc   : > { %1389 = vrcp.f32 %v565_v25 }
 0x3bd   : > { %1391 = vrcp.f32 %v571_v26 }
 0x3be   : > { %1393 = vrcp.f32 %v568_v23 }
 0x3bf   : > { %v630_v28 = vpop.permute.xlu0 %629 }
 0x3c0   : > { %1265 = vmatpush3.bf16.msra.mxu0 %v630_v28 }
 0x3c1   : > { %1270 = vmatprep.subr.bf16.mxu0 %v1488_v4 }
 0x3c6   : > { %v1390_v30 = vpop.eup %1389 }
 0x3c7   : > { %v593_v38 = vmul.f32 %v1390_v30, %v1696_v47  ;;  %v1392_v35 = vpop.eup %1391 }
 0x3c8   : > { %v1394_v37 = vpop.eup %1393  ;;  %v595_v39 = vmul.f32 %v1392_v35, %v1692_v45  ;;  %v843_v35 = vsub.s32 1, %v1608_v7 }
 0x3c9   : > { %v624_v31 = vpack.c.bf16 %v593_v38, %v592_v32  ;;  %v594_v40 = vmul.f32 %v1394_v37, %v1684_v33 }
 0x3cb   : > { %1267 = vmatmul.mubr.msk.bf16.vlgmr.msra.gmra.mrb[4].mxu0 %vm511_vm6, %v624_v31  ;;  %v625_v41 = vpack.c.bf16 %v595_v39, %v594_v40 }
 0x3cc   : > { %1271 = vmatpush3.bf16.msra.mxu0 %v678_v36  ;;  %1272 = vmatprep.mubr.msk.bf16.mxu0 %vm1489_vm0, %v1488_v4  ;;  %v844_v36 = vrot.slane %v1637_v27, %v843_v35 }
 0x3cd   : > { %1282 = vmatprep.subr.bf16.mxu0 %v1488_v4 }
 0x3d3   : > { %1273 = vmatmul.mubr.msk.bf16.vlgmr.msra.gmra.mrb[8].mxu0 %vm511_vm6, %v625_v41 }
 0x3d4   : > { %1284 = vmatprep.mubr.msk.bf16.mxu0 %vm1489_vm0, %v1488_v4 }
 0x3ec   : > { %v583_v34 = vpop.xlane.xlu1 %582 }
 0x3ed   : > { %1395 = vrcp.f32 %v583_v34 }
 0x3f0   : > { %v580_v42 = vpop.xlane.xlu0 %579  ;;  %v577_v43 = vpop.xlane.xlu1 %576 }
 0x3f1   : > { %1397 = vrcp.f32 %v580_v42 }
 0x3f2   : > { %1399 = vrcp.f32 %v577_v43 }
 0x3f4   : > { %v574_v44 = vpop.xlane.xlu0 %573  ;;  %v726_v46 = vpop.permute.xlu1 %725 }
 0x3f5   : > { %1401 = vrcp.f32 %v574_v44  ;;  %1277 = vmatpush3.bf16.msra.mxu1 %v726_v46 }
 0x3f6   : > { %1288 = vmatprep.subr.bf16.mxu1 %v1488_v4 }
 0x3f7   : > { %v1396_v33 = vpop.eup %1395 }
 0x3f8   : > { %v774_v45 = vpop.permute.xlu0 %773  ;;  %v599_v48 = vmul.f32 %v1396_v33, %v1709_v5 }
 0x3f9   : > { %1283 = vmatpush3.bf16.msra.mxu0 %v774_v45 }
 0x3fa   : > { %1296 = vmatprep.subr.bf16.mxu0 %v1488_v4 }
 0x3fb   : > { %v1398_v47 = vpop.eup %1397 }
 0x3fc   : > { %v598_v49 = vmul.f32 %v1398_v47, %v1711_v6  ;;  %v1400_v50 = vpop.eup %1399 }
 0x3fd   : > { %v597_v53 = vmul.f32 %v1400_v50, %v1715_v10 }
 0x3fe   : > { %v627_v51 = vpack.c.bf16 %v599_v48, %v598_v49 }
 0x3ff   : > { %v1402_v52 = vpop.eup %1401 }
 0x400   : > { %v596_v54 = vmul.f32 %v1402_v52, %v1721_v12  ;;  %1285 = vmatmul.mubr.msk.bf16.vlgmr.msra.gmra.mrb[12].mxu0 %vm511_vm6, %v627_v51 }
 0x401   : > { %1300 = vmatprep.mubr.msk.bf16.mxu0 %vm1489_vm0, %v1488_v4 }
 0x402   : > { %v626_v55 = vpack.c.bf16 %v597_v53, %v596_v54 }
 0x404   : > { %1279 = vmatmul.mubr.msk.bf16.vlgmr.msra.gmra.mrb[8].mxu1 %vm511_vm6, %v626_v55  ;;  %v931_v55 = vld [vmem:[%s1914_s4 + $0x8] sm:$0xff] }
 0x405   : > { %1292 = vmatprep.mubr.msk.bf16.mxu1 %vm1489_vm0, %v1488_v4  ;;  %1289 = vmatpush3.bf16.msra.mxu1 %v839_v58  ;;  %v933_v58 = vld [vmem:[%s1914_s4 + $0x18] sm:$0xff] }
 0x406   : > { %1290 = vmatprep.subr.bf16.mxu1 %v1488_v4  ;;  %v936_v59 = vpack.c.bf16 %v933_v58, %v932_v57  ;;  %v1074_v58 = vld [vmem:[%s1916_s6 + $0x10] sm:$0xff] }
 0x409   : > { %1291 = vmatpush3.bf16.msra.mxu1 %v840_v61  ;;  %v988_v61 = vld [vmem:[%s1915_s5 + $0x8] sm:$0xff] }
 0x40a   : > { %1304 = vmatprep.subr.bf16.mxu1 %v1488_v4 }
 0x49e   : > { %v669_v62 = vpop.f32.mrb[4].mxu0 }
 0x49f   : > { %v1268_v63 = vpop.f32.mrb[5].mxu0  ;;  %v820_v3 = vsel %vm299_vm2, %v669_v62, 0.0  ;;  %v989_v62 = vld [vmem:[%s1915_s5 + $0x10] sm:$0xff] }
 0x4a0   : > { %v672_v0 = vpop.f32.mrb[6].mxu0  ;;  %v996_v63 = vpack.c.bf16 %v988_v61, %v987_v60 }
 0x4a1   : > { %v1269_v1 = vpop.f32.mrb[7].mxu0  ;;  %v827_v11 = vsel %vm299_vm2, %v672_v0, 0.0  ;;  %v990_v0 = vld [vmem:[%s1915_s5 + $0x18] sm:$0xff] }
 0x4a2   : > { %v997_v1 = vpack.c.bf16 %v990_v0, %v989_v62  ;;  %v1064_v0 = vsub.s32 4, %v1608_v7 }
 0x4a6   : > { %v717_v2 = vpop.f32.mrb[8].mxu0 }
 0x4a7   : > { %v821_v5 = vsel %vm299_vm2, %v717_v2, 0.0  ;;  %v1274_v6 = vpop.f32.mrb[9].mxu0 }
 0x4a8   : > { %v822_v8 = vadd.f32 %v821_v5, %v820_v3  ;;  %v720_v10 = vpop.f32.mrb[10].mxu0 }
 0x4a9   : > { %v828_v9 = vsel %vm299_vm2, %v720_v10, 0.0  ;;  %v1275_v12 = vpop.f32.mrb[11].mxu0 }
 0x4aa   : > { %v829_v13 = vadd.f32 %v828_v9, %v827_v11  ;;  %v920_v11 = vsub.s32 2, %v1608_v7  ;;  %v926_v12 = vsub.s32 3, %v1608_v7 }
 0x4ac   : > { %v921_v9 = vrot.slane %v1637_v27, %v920_v11  ;;  %v287_v11 = vld [vmem:[%s1917_s7 + $0x8] sm:$0x1] }
 0x4d3   : > { %v813_v14 = vpop.f32.mrb[12].mxu0 }
 0x4d4   : > { %v1286_v17 = vpop.f32.mrb[13].mxu0  ;;  %v825_v25 = vsel %vm299_vm2, %v813_v14, 0.0 }
 0x4d5   : > { %v816_v18 = vpop.f32.mrb[14].mxu0 }
 0x4d6   : > { %v1287_v19 = vpop.f32.mrb[15].mxu0  ;;  %v832_v32 = vsel %vm299_vm2, %v816_v18, 0.0 }
 0x4d7   : > { %v765_v20 = vpop.f32.mrb[8].mxu1 }
 0x4d8   : > { %v823_v21 = vsel %vm299_vm2, %v765_v20, 0.0  ;;  %v1280_v22 = vpop.f32.mrb[9].mxu1  ;;  %v927_v20 = vrot.slane %v1637_v27, %v926_v12 }
 0x4d9   : > { %v824_v23 = vadd.f32 %v823_v21, %v822_v8  ;;  %v768_v24 = vpop.f32.mrb[10].mxu1 }
 0x4da   : > { %v830_v26 = vsel %vm299_vm2, %v768_v24, 0.0  ;;  %v1281_v28 = vpop.f32.mrb[11].mxu1 }
 0x4db   : > { %v826_v29 = vadd.f32 %v825_v25, %v824_v23  ;;  %v831_v30 = vadd.f32 %v830_v26, %v829_v13  ;;  %v991_v25 = vld [vmem:[%s1915_s5 + $0x20] sm:$0xff]  ;;  %v992_v26 = vld [vmem:[%s1915_s5 + $0x28] sm:$0xff] }
 0x4dc   : > { %v998_v28 = vpack.c.bf16 %v992_v26, %v991_v25 }
 0x4dd   : > { %v833_v38 = vadd.f32 %v832_v32, %v831_v30  ;;  %v994_v30 = vld [vmem:[%s1915_s5 + $0x38] sm:$0xff] }
 0x4df   : > { %v838_v31 = vpack.c.bf16 %v833_v38, %v826_v29  ;;  %v993_v29 = vld [vmem:[%s1915_s5 + $0x30] sm:$0xff]  ;;  %v939_v38 = vsub.s32 6, %v1608_v7 }
 0x4e0   : > { %v999_v32 = vpack.c.bf16 %v994_v30, %v993_v29 }
 0x4e1   : > { %1293 = vmatmul.mubr.msk.bf16.vlgmr.msra.gmra.mrb[12].mxu1 %vm299_vm2, %v838_v31  ;;  %v940_v31 = vrot.slane %v1637_v27, %v939_v38 }
 0x4e2   : > { %1312 = vmatprep.mubr.msk.bf16.mxu1 %vm1489_vm0, %v1488_v4  ;;  %1305 = vmatpush3.bf16.msra.mxu1 %v996_v63 }
 0x4e3   : > { %1306 = vmatprep.subr.bf16.mxu1 %v1488_v4 }
 0x4e6   : > { %1307 = vmatpush3.bf16.msra.mxu1 %v997_v1  ;;  %v1069_v1 = vsub.s32 5, %v1608_v7 }
 0x4e7   : > { %1308 = vmatprep.subr.bf16.mxu1 %v1488_v4 }
 0x4ea   : > { %1309 = vmatpush3.bf16.msra.mxu1 %v998_v28 }
 0x4eb   : > { %1310 = vmatprep.subr.bf16.mxu1 %v1488_v4 }
 0x4ee   : > { %1311 = vmatpush3.bf16.msra.mxu1 %v999_v32 }
 0x5b4   : > { %v882_v37 = vpop.f32.mrb[12].mxu1 }
 0x5b5   : > { %v883_v39 = vadd.f32 %v882_v37, %v844_v36  ;;  %v1294_v40 = vpop.f32.mrb[13].mxu1 }
 0x5b6   : > { %v885_v41 = vpop.f32.mrb[14].mxu1 }
 0x5b7   : > { %v886_v34 = vadd.f32 %v885_v41, %v844_v36  ;;  %v1295_v42 = vpop.f32.mrb[15].mxu1  ;;  %v889_v43 = vadd.f32 %v883_v39, %v1618_v15 }
 0x5b9   : > { %v891_v44 = vsel %vm299_vm2, %v889_v43, 0.0  ;;  %v890_v46 = vadd.f32 %v886_v34, %v1620_v16  ;;  %v930_v16 = vld [vmem:[%s1914_s4] sm:$0xff] }
 0x5ba   : > { %892 = vadd.xlane.f32.xlu1 %v891_v44  ;;  %v935_v56 = vpack.c.bf16 %v931_v55, %v930_v16  ;;  %v1002_v44 = vsub.s32 7, %v1608_v7  ;;  %v1072_v55 = vld [vmem:[%s1916_s6] sm:$0xff] }
 0x5bb   : > { %v894_v45 = vsel %vm299_vm2, %v890_v46, 0.0 }
 0x5bc   : > { %895 = vadd.xlane.f32.xlu0 %v894_v45  ;;  %1297 = vmatpush3.bf16.msra.mxu0 %v935_v56  ;;  %v1073_v56 = vld [vmem:[%s1916_s6 + $0x8] sm:$0xff] }
 0x5bd   : > { %1298 = vmatprep.subr.bf16.mxu0 %v1488_v4  ;;  %v1077_v57 = vpack.c.bf16 %v1073_v56, %v1072_v55 }
 0x5c0   : > { %1299 = vmatpush3.bf16.msra.mxu0 %v936_v59  ;;  %v1075_v59 = vld [vmem:[%s1916_s6 + $0x18] sm:$0xff] }
 0x5c1   : > { %1316 = vmatprep.subr.bf16.mxu0 %v1488_v4  ;;  %v1078_v60 = vpack.c.bf16 %v1075_v59, %v1074_v58 }
 0x647   : > { %v893_v33 = vpop.xlane.xlu1 %892 }
 0x648   : > { %v898_v47 = vmul.f32 0.03125, %v893_v33 }
 0x649   : > { %v896_v48 = vpop.xlane.xlu0 %895 }
 0x64a   : > { %v900_v49 = vsub.f32 %v889_v43, %v898_v47  ;;  %v899_v50 = vmul.f32 0.03125, %v896_v48 }
 0x64c   : > { %v901_v51 = vsub.f32 %v890_v46, %v899_v50  ;;  %v902_v52 = vmul.f32 %v900_v49, %v900_v49  ;;  %v1003_v46 = vrot.slane %v1637_v27, %v1002_v44 }
 0x64e   : > { %v904_v53 = vsel %vm299_vm2, %v902_v52, 0.0  ;;  %v903_v54 = vmul.f32 %v901_v51, %v901_v51 }
 0x64f   : > { %905 = vadd.xlane.f32.xlu0 %v904_v53 }
 0x650   : > { %v907_v15 = vsel %vm299_vm2, %v903_v54, 0.0 }
 0x651   : > { %908 = vadd.xlane.f32.xlu1 %v907_v15 }
 0x6dc   : > { %v906_v2 = vpop.xlane.xlu0 %905 }
 0x6dd   : > { %v910_v3 = vmul.f32 0.03125, %v906_v2  ;;  %v1065_v2 = vrot.slane %v1637_v27, %v1064_v0 }
 0x6de   : > { %v909_v5 = vpop.xlane.xlu1 %908 }
 0x6df   : > { %v912_v6 = vadd.f32 1e-05, %v910_v3  ;;  %v911_v8 = vmul.f32 0.03125, %v909_v5 }
 0x6e1   : > { %1403 = vrsqrt.f32 %v912_v6  ;;  %v913_v10 = vadd.f32 1e-05, %v911_v8  ;;  %v1070_v6 = vrot.slane %v1637_v27, %v1069_v1 }
 0x6e3   : > { %1405 = vrsqrt.f32 %v913_v10 }
 0x6eb   : > { %v1404_v13 = vpop.eup %1403 }
 0x6ec   : > { %v916_v14 = vmul.f32 %v1404_v13, %v900_v49 }
 0x6ed   : > { %v1406_v17 = vpop.eup %1405 }
 0x6ee   : > { %v922_v18 = vmul.f32 %v921_v9, %v916_v14  ;;  %v917_v19 = vmul.f32 %v1406_v17, %v901_v51 }
 0x6f0   : > { %v923_v21 = vmul.f32 %v921_v9, %v917_v19  ;;  %v928_v22 = vadd.f32 %v927_v20, %v922_v18 }
 0x6f2   : > { %v929_v23 = vadd.f32 %v927_v20, %v923_v21 }
 0x6f4   : > { %v934_v24 = vpack.c.bf16 %v929_v23, %v928_v22 }
 0x6f6   : > { %1301 = vmatmul.mubr.msk.bf16.vlgmr.msra.gmra.mrb[16].mxu0 %vm299_vm2, %v934_v24 }
 0x6f7   : > { %1320 = vmatprep.mubr.msk.bf16.mxu0 %vm1489_vm0, %v1488_v4  ;;  %1317 = vmatpush3.bf16.msra.mxu0 %v1077_v57 }
 0x6f8   : > { %1318 = vmatprep.subr.bf16.mxu0 %v1488_v4 }
 0x6fb   : > { %1319 = vmatpush3.bf16.msra.mxu0 %v1078_v60 }
 0x7c9   : > { %v978_v35 = vpop.f32.mrb[16].mxu0 }
 0x7ca   : > { %v979_v36 = vadd.f32 %v978_v35, %v940_v31  ;;  %v1302_v37 = vpop.f32.mrb[17].mxu0 }
 0x7cb   : > { %v981_v39 = vpop.f32.mrb[18].mxu0 }
 0x7cc   : > { %v982_v40 = vadd.f32 %v981_v39, %v940_v31  ;;  %v1303_v41 = vpop.f32.mrb[19].mxu0  ;;  %v985_v34 = vmax.f32 %v979_v36, 0.0 }
 0x7ce   : > { %v986_v42 = vmax.f32 %v982_v40, 0.0 }
 0x7d0   : > { %v995_v43 = vpack.c.bf16 %v986_v42, %v985_v34 }
 0x7d2   : > { %1313 = vmatmul.mubr.msk.bf16.vlgmr.msra.gmra.mrb[16].mxu1 %vm1004_vm7, %v995_v43 }
 0x8a5   : > { %v1042_v45 = vpop.f32.mrb[16].mxu1 }
 0x8a6   : > { %v1043_v33 = vadd.f32 %v1042_v45, %v1003_v46  ;;  %v1314_v47 = vpop.f32.mrb[17].mxu1 }
 0x8a7   : > { %v1045_v48 = vpop.f32.mrb[18].mxu1 }
 0x8a8   : > { %v1315_v49 = vpop.f32.mrb[19].mxu1  ;;  %v1048_v50 = vadd.f32 %v1043_v33, %v928_v22 }
 0x8aa   : > { %v1049_v51 = vsel %vm299_vm2, %v1048_v50, 0.0 }
 0x8ab   : > { %1050 = vadd.xlane.f32.xlu0 %v1049_v51 }
 0x938   : > { %v1051_v52 = vpop.xlane.xlu0 %1050 }
 0x939   : > { %v1052_v53 = vmul.f32 0.03125, %v1051_v52 }
 0x93b   : > { %v1053_v54 = vsub.f32 %v1048_v50, %v1052_v53 }
 0x93d   : > { %v1054_v15 = vmul.f32 %v1053_v54, %v1053_v54 }
 0x93f   : > { %v1055_v16 = vsel %vm299_vm2, %v1054_v15, 0.0 }
 0x940   : > { %1056 = vadd.xlane.f32.xlu1 %v1055_v16 }
 0x9cd   : > { %v1057_v61 = vpop.xlane.xlu1 %1056 }
 0x9ce   : > { %v1058_v62 = vmul.f32 0.03125, %v1057_v61 }
 0x9d0   : > { %v1059_v63 = vadd.f32 1e-05, %v1058_v62 }
 0x9d2   : > { %1407 = vrsqrt.f32 %v1059_v63 }
 0x9dc   : > { %v1408_v3 = vpop.eup %1407 }
 0x9dd   : > { %v1061_v5 = vmul.f32 %v1408_v3, %v1053_v54 }
 0x9df   : > { %v1066_v8 = vmul.f32 %v1065_v2, %v1061_v5 }
 0x9e1   : > { %v1071_v4 = vadd.f32 %v1070_v6, %v1066_v8 }
 0x9e3   : > { %v1076_v10 = vpack.c.bf16 %v1071_v4, %v1071_v4 }
 0x9e5   : > { %1321 = vmatmul.mubr.msk.bf16.vlgmr.msra.gmra.mrb[20].mxu0 %vm299_vm2, %v1076_v10 }
 0xab8   : > { %v1116_v7 = vpop.f32.mrb[20].mxu0 }
 0xab9   : > { %v1117_v9 = vadd.f32 %v1116_v7, %v287_v11  ;;  %v1322_v12 = vpop.f32.mrb[21].mxu0 }
 0xaba   : > { %v1119_v27 = vpop.f32.mrb[22].mxu0 }
 0xabb   : > { %v1323_v13 = vpop.f32.mrb[23].mxu0  ;;  %1123 = vst.msk [vmem:[%s277_s27] sm:$0x1] %vm1122_vm8, %v1117_v9 }
 0xabc   : > { %1434 = shalt.err (!%p1431_p8)
}
 0xabd   : > { %s1435_s22 = scalar_lea.hbm %s1868_s9, 16  ;;  %s1439_s25 = scalar_lea.hbm %s1918_s8, 32 }
 0xabe   : > { %p1436_p9 = scmp.ne.s32.totalorder %s1868_s9, %s1435_s22  ;;  %p1440_p0 = scmp.lt.u32.totalorder %s1868_s9, %s1918_s8 }
 0xabf   : > { %p1441_p1 = scmp.lt.u32.totalorder %s1439_s25, %s1435_s22  ;;  %p1443_p3 = scmp.lt.u32.totalorder %s1435_s22, %s1868_s9 }
 0xac0   : > { %p1437_p12 = pnand %p1436_p9, %p1581_p10 }
 0xac1   : > { %p1442_p2 = por %p1441_p1, %p1440_p0 }
 0xac2   : > { %p1438_p13 = pneg %p1437_p12 }
 0xac3   : > { %p1444_p4 = por %p1443_p3, %p1442_p2 }
 0xac5   : > { %p1445_p5 = pnand %p1444_p4, %p1438_p13 }
 0xac7   : > { %1448 = shalt.err (!%p1445_p5)
}
 0xac8   : > { %1325 = dma.vmem_to_hbm [thread:$0]  (%p1581_p10), %s1870_s28, 16, %s1868_s9, %s1125_s13  }
 0xac9 PF: > { %p1331_p6 = scmp.ge.s32.totalorder %s1485_s12, 2  ;;  %s1149_s29 = sand.u32 1, %s1473_s10  }
 0xaca   : > { %s1150_s30 = scalar_lea.sflag [#allocation5], %s1149_s29 }
 0xacb   : > { %p1328_p7 = pnand %p1331_p6, %p1585_p11 }
 0xacd   : > { %1468 = dma.done.wait (!%p1328_p7), %s1150_s30, 16  }
 0xace   : > { %1470 = vsyncadd (!%p1328_p7), %s1150_s30, 4294967280  ;;  %p24_p8 = scmp.ge.s32.totalorder %s1568_s15, 4   ;;  %s1921_s10 = smov %s1477_s11 }
 0xacf   : > { %s1922_s11 = smov %s1481_s0  ;;  %s1923_s0 = smov %s1579_s18 }
 0xad0   : > { %s1924_s12 = smov %s1568_s15  ;;  %26 = sbr.rel (!%p24_p8) target bundleno = 18 (0x12), region = 83 }
 0xad7   :  { %1154 = vsyncpa [#allocation5], 1 }
 0xad8   :  { %1156 = vsyncpa [#allocation5 + $0x1], 1 }

</bundles_post_ra>
